<compile_context>
chip_gen: v5e
topology: v5e:2x2
jax: 0.10.0
libtpu: 0.0.40
codegen_flags: <defaults>
</compile_context>

<pallas_src>
import functools

import jax
import jax.numpy as jnp
from jax import lax
from jax.experimental import pallas as pl
from jax.experimental.pallas import tpu as pltpu


def _ceil_to(x, m):
    return ((x + m - 1) // m) * m


# ----------------------------- Pallas kernel ------------------------------ #
def _mobileone_kernel(x_ref, ml_ref, mr_ref, wdw_ref, bdw_ref, wpw_ref, bpw_ref,
                      o_ref, *, W):
    # x_ref:   (nb, C1, HWin)  f32   padded input: W leading zeros, >=W+1 trailing zeros
    # ml_ref:  (1, HWout)      f32   column mask, 0 where w == 0     (dw=-1 taps)
    # mr_ref:  (1, HWout)      f32   column mask, 0 where w == W-1   (dw=+1 taps)
    # wdw_ref: (C1, 9)         f32   folded depthwise 3x3 weights, tap=(dh+1)*3+(dw+1)
    # bdw_ref: (C1, 1)         f32   folded depthwise bias
    # wpw_ref: (C2, C1)        bf16  folded pointwise 1x1 weights
    # bpw_ref: (C2, 1)         f32   folded pointwise bias
    # o_ref:   (nb, C2, HWout) out dtype
    nb, _, HWin = x_ref.shape
    HWout = o_ref.shape[-1]

    wdw = wdw_ref[...]
    bdw = bdw_ref[...]
    wpw = wpw_ref[...]
    bpw = bpw_ref[...]
    m_left = ml_ref[...]          # (1, HWout) broadcast over channels
    m_right = mr_ref[...]

    for b in range(nb):                                   # static unroll over images
        x = x_ref[b]                                      # (C1, HWin)

        # Depthwise 3x3, stride 1: 9 lane-rolled MACs (implicit im2col).  Row edges
        # handled by zero padding; column edges by one mask multiply per column group.
        col_sums = [None, None, None]                     # dw = -1, 0, +1
        for dh in (-1, 0, 1):
            for dwi, dw in enumerate((-1, 0, 1)):
                off = (dh + 1) * W + dw                   # lane offset in padded input
                tap = (dh + 1) * 3 + (dw + 1)
                src = x if off == 0 else pltpu.roll(x, shift=(-off) % HWin, axis=1)
                term = src[:, :HWout] * wdw[:, tap:tap + 1]
                col_sums[dwi] = term if col_sums[dwi] is None else col_sums[dwi] + term
        acc = col_sums[1] + col_sums[0] * m_left + col_sums[2] * m_right

        act = jnp.maximum(acc + bdw, 0.0)                 # DW bias + ReLU, (C1, HWout)

        # Pointwise 1x1 on the MXU: bf16 operands, f32 accumulation.
        y = jnp.dot(wpw, act.astype(jnp.bfloat16),
                    preferred_element_type=jnp.float32)   # (C2, HWout)
        o_ref[b] = jnp.maximum(y + bpw, 0.0).astype(o_ref.dtype)


# ------------------------------ JAX wrapper -------------------------------- #
def mobileone_block_forward(x_nchw, w_dw, b_dw, w_pw, b_pw, out_dtype=jnp.bfloat16):
    """Fused, reparameterized MobileOneBlock forward (stride=1). NCHW in/out."""
    N, C1, H, W = x_nchw.shape
    C2 = w_pw.shape[0]
    HW = H * W
    HWout = _ceil_to(HW, 128)                   # lane-dense output length
    HWin = _ceil_to(HW + 2 * W + 1, 128)        # W leading + >=W+1 trailing zeros

    x_flat = x_nchw.reshape(N, C1, HW).astype(jnp.float32)       # free reshape
    x_pad = jnp.pad(x_flat, ((0, 0), (0, 0), (W, HWin - W - HW)))

    # Column-edge masks precomputed on host (no in-kernel iota / divide).
    col = jnp.arange(HWout, dtype=jnp.int32) % W
    m_left = (col != 0).astype(jnp.float32).reshape(1, HWout)
    m_right = (col != W - 1).astype(jnp.float32).reshape(1, HWout)

    wdw = w_dw.reshape(C1, 9).astype(jnp.float32)
    bdw = b_dw.reshape(C1, 1).astype(jnp.float32)
    wpw = w_pw.astype(jnp.bfloat16)                               # bf16 MXU operand
    bpw = b_pw.reshape(C2, 1).astype(jnp.float32)

    out_isz = jnp.dtype(out_dtype).itemsize

    # Images per grid step: pack tiny feature maps so each step touches >=1024 lanes
    # (amortizes ~0.35us/step overhead) while staying well inside scoped VMEM.
    def _blk_bytes(n):  # double-buffered in+out blocks
        return 2 * n * (C1 * HWin * 4 + C2 * HWout * out_isz)

    nb = 1
    while (2 * nb <= N and N % (2 * nb) == 0 and nb * HWout < 1024
           and _blk_bytes(2 * nb) < (24 << 20)):
        nb *= 2

    # Explicit scoped-VMEM limit (v5e default is only 16 MiB; v7x physical is 64 MiB).
    interm = 10 * nb * (C1 + C2) * HWout * 4
    weights = C1 * 40 + C2 * (2 * C1 + 4) + 2 * HWout * 4
    vmem_limit = int(min(64 << 20, max(32 << 20, 2 * (_blk_bytes(nb) + interm + weights))))

    kernel = functools.partial(_mobileone_kernel, W=W)
    out = pl.pallas_call(
        kernel,
        out_shape=jax.ShapeDtypeStruct((N, C2, HWout), out_dtype),
        grid_spec=pltpu.PrefetchScalarGridSpec(
            num_scalar_prefetch=0,
            grid=(N // nb,),
            in_specs=[
                pl.BlockSpec((nb, C1, HWin), lambda n: (n, 0, 0)),
                pl.BlockSpec((1, HWout), lambda n: (0, 0)),
                pl.BlockSpec((1, HWout), lambda n: (0, 0)),
                pl.BlockSpec((C1, 9), lambda n: (0, 0)),
                pl.BlockSpec((C1, 1), lambda n: (0, 0)),
                pl.BlockSpec((C2, C1), lambda n: (0, 0)),
                pl.BlockSpec((C2, 1), lambda n: (0, 0)),
            ],
            out_specs=pl.BlockSpec((nb, C2, HWout), lambda n: (n, 0, 0)),
        ),
        compiler_params=pltpu.CompilerParams(
            dimension_semantics=("parallel",),
            vmem_limit_bytes=vmem_limit),
    )(x_pad, m_left, m_right, wdw, bdw, wpw, bpw)

    # TODO(synk): keep the padded (C2, HWout) layout between blocks in a real network.
    return out[:, :, :HW].reshape(N, C2, H, W)               # free reshape, no transpose


# ------------------- host-side reparameterization (BN fold) ----------------- #
def reparameterize(params, C1, C2, eps=1e-5):
    """Fold all branches + eval-mode BN into (w_dw (C1,3,3), b_dw, w_pw (C2,C1), b_pw)."""
    w_dw = jnp.zeros((C1, 3, 3), jnp.float32)
    b_dw = jnp.zeros((C1,), jnp.float32)
    for w, (g, b, m, v) in zip(params["dw3_w"], params["dw3_bn"]):
        s = g / jnp.sqrt(v + eps)
        w_dw = w_dw + w[:, 0] * s[:, None, None]
        b_dw = b_dw + (b - m * s)
    g, b, m, v = params["dw1_bn"]
    s = g / jnp.sqrt(v + eps)
    w_dw = w_dw.at[:, 1, 1].add(params["dw1_w"][:, 0, 0, 0] * s)   # 1x1 -> 3x3 center
    b_dw = b_dw + (b - m * s)
    if params["dw_id_bn"] is not None:                             # identity-BN branch
        g, b, m, v = params["dw_id_bn"]
        s = g / jnp.sqrt(v + eps)
        w_dw = w_dw.at[:, 1, 1].add(s)
        b_dw = b_dw + (b - m * s)

    w_pw = jnp.zeros((C2, C1), jnp.float32)
    b_pw = jnp.zeros((C2,), jnp.float32)
    for w, (g, b, m, v) in zip(params["pw_w"], params["pw_bn"]):
        s = g / jnp.sqrt(v + eps)
        w_pw = w_pw + w[:, :, 0, 0] * s[:, None]
        b_pw = b_pw + (b - m * s)
    if params["pw_id_bn"] is not None:                             # identity-BN branch
        g, b, m, v = params["pw_id_bn"]
        s = g / jnp.sqrt(v + eps)
        w_pw = w_pw + jnp.diag(s)
        b_pw = b_pw + (b - m * s)
    return w_dw, b_dw, w_pw, b_pw


# ------------------------- branch-wise reference ---------------------------- #
def _bn_eval(x, gamma, beta, mean, var, eps=1e-5):
    s = gamma / jnp.sqrt(var + eps)
    return x * s.reshape(1, -1, 1, 1) + (beta - mean * s).reshape(1, -1, 1, 1)


def _conv(x, w, stride, padding, groups):
    return lax.conv_general_dilated(
        x, w, window_strides=(stride, stride),
        padding=[(padding, padding), (padding, padding)],
        dimension_numbers=("NCHW", "OIHW", "NCHW"),
        feature_group_count=groups,
        precision=lax.Precision.HIGHEST)


def reference_forward(x, params, eps=1e-5):
    """Exact MobileOneBlock.forward (deploy=False, use_se=False, stride=1, eval BN)."""
    C1 = x.shape[1]
    s = _bn_eval(x, *params["dw_id_bn"], eps=eps) if params["dw_id_bn"] is not None else 0.0
    for w, bn in zip(params["dw3_w"], params["dw3_bn"]):
        s = s + _bn_eval(_conv(x, w, 1, 1, C1), *bn, eps=eps)
    s = s + _bn_eval(_conv(x, params["dw1_w"], 1, 0, C1), *params["dw1_bn"], eps=eps)
    a = jax.nn.relu(s)                                   # se = Identity

    t = _bn_eval(a, *params["pw_id_bn"], eps=eps) if params["pw_id_bn"] is not None else 0.0
    for w, bn in zip(params["pw_w"], params["pw_bn"]):
        t = t + _bn_eval(_conv(a, w, 1, 0, 1), *bn, eps=eps)
    return jax.nn.relu(t)


# ------------------------------ test params --------------------------------- #
def _make_bn(key, C):
    kg, kb, km, kv = jax.random.split(key, 4)
    gamma = 1.0 + 0.1 * jax.random.normal(kg, (C,), dtype=jnp.float32)
    beta = 0.1 * jax.random.normal(kb, (C,), dtype=jnp.float32)
    mean = 0.1 * jax.random.normal(km, (C,), dtype=jnp.float32)
    var = jnp.abs(1.0 + 0.1 * jax.random.normal(kv, (C,), dtype=jnp.float32))
    return (gamma, beta, mean, var)


def make_params(key, C1, C2, k):
    keys = iter(jax.random.split(key, 4 * k + 6))
    p = {}
    p["dw3_w"] = [0.1 * jax.random.normal(next(keys), (C1, 1, 3, 3), dtype=jnp.float32)
                  for _ in range(k)]
    p["dw3_bn"] = [_make_bn(next(keys), C1) for _ in range(k)]
    p["dw1_w"] = 0.1 * jax.random.normal(next(keys), (C1, 1, 1, 1), dtype=jnp.float32)
    p["dw1_bn"] = _make_bn(next(keys), C1)
    p["dw_id_bn"] = _make_bn(next(keys), C1) if C2 == C1 else None   # stride==1 assumed
    p["pw_w"] = [0.1 * jax.random.normal(next(keys), (C2, C1, 1, 1), dtype=jnp.float32)
                 for _ in range(k)]
    p["pw_bn"] = [_make_bn(next(keys), C2) for _ in range(k)]
    p["pw_id_bn"] = _make_bn(next(keys), C1) if C2 == C1 else None
    return p


# -------------------------------- main --------------------------------------- #
if __name__ == "__main__":
    key = jax.random.PRNGKey(0)
    k_branches = 4
    eps = 1e-5

    # Config A: C1 != C2 (identity-BN branches absent).
    # Config B: C1 == C2 (dw/pw identity-BN branches active).
    for (N, C1, C2, H, W) in [(2, 4, 8, 16, 16), (2, 8, 8, 16, 16)]:
        kx, kp, key = jax.random.split(key, 3)
        x = jax.random.normal(kx, (N, C1, H, W), dtype=jnp.float32)
        params = make_params(kp, C1, C2, k_branches)

        w_dw, b_dw, w_pw, b_pw = reparameterize(params, C1, C2, eps)
        ref = reference_forward(x, params, eps)

        # Tolerances sized for bf16 MXU operands (and bf16 output on the bf16 path);
        # the fold itself is exact in f32.
        for out_dtype, tol in ((jnp.float32, 6e-2), (jnp.bfloat16, 8e-2)):
            out = mobileone_block_forward(x, w_dw, b_dw, w_pw, b_pw, out_dtype=out_dtype)
            out = jax.block_until_ready(out)
            assert out.shape == (N, C2, H, W), out.shape
            err = float(jnp.max(jnp.abs(out.astype(jnp.float32) - ref)))
            assert err < tol, (C1, C2, str(out_dtype), err)

    print("KERNEL_OK")
</pallas_src>

<mosaic_0001>
module attributes {stable_mosaic.version = 11 : i64} {
  func.func @_mobileone_kernel(%arg0: i32, %arg1: memref<2x4x384xf32, #tpu.memory_space<vmem>>, %arg2: memref<1x256xf32, #tpu.memory_space<vmem>>, %arg3: memref<1x256xf32, #tpu.memory_space<vmem>>, %arg4: memref<4x9xf32, #tpu.memory_space<vmem>>, %arg5: memref<4x1xf32, #tpu.memory_space<vmem>>, %arg6: memref<8x4xbf16, #tpu.memory_space<vmem>>, %arg7: memref<8x1xf32, #tpu.memory_space<vmem>>, %arg8: memref<2x8x256xf32, #tpu.memory_space<vmem>>) attributes {dimension_semantics = [#tpu.dimension_semantics<parallel>], iteration_bounds = array<i64: 1>, scalar_prefetch = 0 : i64, scratch_operands = 0 : i64, tpu.core_type = #tpu.core_type<tc>, window_params = [{transform_indices = @transform_0, window_bounds = array<i64: 2, 4, 384>}, {pipeline_mode = #tpu.pipeline_mode<synchronous>, transform_indices = @transform_1, window_bounds = array<i64: 1, 256>}, {pipeline_mode = #tpu.pipeline_mode<synchronous>, transform_indices = @transform_2, window_bounds = array<i64: 1, 256>}, {pipeline_mode = #tpu.pipeline_mode<synchronous>, transform_indices = @transform_3, window_bounds = array<i64: 4, 9>}, {pipeline_mode = #tpu.pipeline_mode<synchronous>, transform_indices = @transform_4, window_bounds = array<i64: 4, 1>}, {pipeline_mode = #tpu.pipeline_mode<synchronous>, transform_indices = @transform_5, window_bounds = array<i64: 8, 4>}, {pipeline_mode = #tpu.pipeline_mode<synchronous>, transform_indices = @transform_6, window_bounds = array<i64: 8, 1>}, {transform_indices = @transform_7, window_bounds = array<i64: 2, 8, 256>}]} {
    %c0 = arith.constant 0 : index
    %c0_0 = arith.constant 0 : index
    %0 = vector.load %arg4[%c0, %c0_0] : memref<4x9xf32, #tpu.memory_space<vmem>>, vector<4x9xf32>
    %c0_1 = arith.constant 0 : index
    %c0_2 = arith.constant 0 : index
    %1 = vector.load %arg5[%c0_1, %c0_2] : memref<4x1xf32, #tpu.memory_space<vmem>>, vector<4x1xf32>
    %c0_3 = arith.constant 0 : index
    %c0_4 = arith.constant 0 : index
    %2 = vector.load %arg6[%c0_3, %c0_4] : memref<8x4xbf16, #tpu.memory_space<vmem>>, vector<8x4xbf16>
    %c0_5 = arith.constant 0 : index
    %c0_6 = arith.constant 0 : index
    %3 = vector.load %arg7[%c0_5, %c0_6] : memref<8x1xf32, #tpu.memory_space<vmem>>, vector<8x1xf32>
    %c0_7 = arith.constant 0 : index
    %c0_8 = arith.constant 0 : index
    %4 = vector.load %arg2[%c0_7, %c0_8] : memref<1x256xf32, #tpu.memory_space<vmem>>, vector<1x256xf32>
    %c0_9 = arith.constant 0 : index
    %c0_10 = arith.constant 0 : index
    %5 = vector.load %arg3[%c0_9, %c0_10] : memref<1x256xf32, #tpu.memory_space<vmem>>, vector<1x256xf32>
    %c0_11 = arith.constant 0 : index
    %c0_12 = arith.constant 0 : index
    %c0_13 = arith.constant 0 : index
    %6 = vector.load %arg1[%c0_11, %c0_12, %c0_13] : memref<2x4x384xf32, #tpu.memory_space<vmem>>, vector<1x4x384xf32>
    %7 = vector.shape_cast %6 : vector<1x4x384xf32> to vector<4x384xf32>
    %c1_i32 = arith.constant 1 : i32
    %8 = tpu.dynamic_rotate %7 by %c1_i32 dim 1 : vector<4x384xf32>, i32 -> vector<4x384xf32>
    %9 = vector.extract_strided_slice %8 {offsets = [0, 0], sizes = [4, 256], strides = [1, 1]} : vector<4x384xf32> to vector<4x256xf32>
    %10 = vector.extract_strided_slice %0 {offsets = [0, 0], sizes = [4, 1], strides = [1, 1]} : vector<4x9xf32> to vector<4x1xf32>
    %11 = vector.broadcast %10 : vector<4x1xf32> to vector<4x256xf32>
    %12 = arith.mulf %9, %11 : vector<4x256xf32>
    %13 = vector.extract_strided_slice %7 {offsets = [0, 0], sizes = [4, 256], strides = [1, 1]} : vector<4x384xf32> to vector<4x256xf32>
    %14 = vector.extract_strided_slice %0 {offsets = [0, 1], sizes = [4, 1], strides = [1, 1]} : vector<4x9xf32> to vector<4x1xf32>
    %15 = vector.broadcast %14 : vector<4x1xf32> to vector<4x256xf32>
    %16 = arith.mulf %13, %15 : vector<4x256xf32>
    %c383_i32 = arith.constant 383 : i32
    %17 = tpu.dynamic_rotate %7 by %c383_i32 dim 1 : vector<4x384xf32>, i32 -> vector<4x384xf32>
    %18 = vector.extract_strided_slice %17 {offsets = [0, 0], sizes = [4, 256], strides = [1, 1]} : vector<4x384xf32> to vector<4x256xf32>
    %19 = vector.extract_strided_slice %0 {offsets = [0, 2], sizes = [4, 1], strides = [1, 1]} : vector<4x9xf32> to vector<4x1xf32>
    %20 = vector.broadcast %19 : vector<4x1xf32> to vector<4x256xf32>
    %21 = arith.mulf %18, %20 : vector<4x256xf32>
    %c369_i32 = arith.constant 369 : i32
    %22 = tpu.dynamic_rotate %7 by %c369_i32 dim 1 : vector<4x384xf32>, i32 -> vector<4x384xf32>
    %23 = vector.extract_strided_slice %22 {offsets = [0, 0], sizes = [4, 256], strides = [1, 1]} : vector<4x384xf32> to vector<4x256xf32>
    %24 = vector.extract_strided_slice %0 {offsets = [0, 3], sizes = [4, 1], strides = [1, 1]} : vector<4x9xf32> to vector<4x1xf32>
    %25 = vector.broadcast %24 : vector<4x1xf32> to vector<4x256xf32>
    %26 = arith.mulf %23, %25 : vector<4x256xf32>
    %27 = arith.addf %12, %26 : vector<4x256xf32>
    %c368_i32 = arith.constant 368 : i32
    %28 = tpu.dynamic_rotate %7 by %c368_i32 dim 1 : vector<4x384xf32>, i32 -> vector<4x384xf32>
    %29 = vector.extract_strided_slice %28 {offsets = [0, 0], sizes = [4, 256], strides = [1, 1]} : vector<4x384xf32> to vector<4x256xf32>
    %30 = vector.extract_strided_slice %0 {offsets = [0, 4], sizes = [4, 1], strides = [1, 1]} : vector<4x9xf32> to vector<4x1xf32>
    %31 = vector.broadcast %30 : vector<4x1xf32> to vector<4x256xf32>
    %32 = arith.mulf %29, %31 : vector<4x256xf32>
    %33 = arith.addf %16, %32 : vector<4x256xf32>
    %c367_i32 = arith.constant 367 : i32
    %34 = tpu.dynamic_rotate %7 by %c367_i32 dim 1 : vector<4x384xf32>, i32 -> vector<4x384xf32>
    %35 = vector.extract_strided_slice %34 {offsets = [0, 0], sizes = [4, 256], strides = [1, 1]} : vector<4x384xf32> to vector<4x256xf32>
    %36 = vector.extract_strided_slice %0 {offsets = [0, 5], sizes = [4, 1], strides = [1, 1]} : vector<4x9xf32> to vector<4x1xf32>
    %37 = vector.broadcast %36 : vector<4x1xf32> to vector<4x256xf32>
    %38 = arith.mulf %35, %37 : vector<4x256xf32>
    %39 = arith.addf %21, %38 : vector<4x256xf32>
    %c353_i32 = arith.constant 353 : i32
    %40 = tpu.dynamic_rotate %7 by %c353_i32 dim 1 : vector<4x384xf32>, i32 -> vector<4x384xf32>
    %41 = vector.extract_strided_slice %40 {offsets = [0, 0], sizes = [4, 256], strides = [1, 1]} : vector<4x384xf32> to vector<4x256xf32>
    %42 = vector.extract_strided_slice %0 {offsets = [0, 6], sizes = [4, 1], strides = [1, 1]} : vector<4x9xf32> to vector<4x1xf32>
    %43 = vector.broadcast %42 : vector<4x1xf32> to vector<4x256xf32>
    %44 = arith.mulf %41, %43 : vector<4x256xf32>
    %45 = arith.addf %27, %44 : vector<4x256xf32>
    %c352_i32 = arith.constant 352 : i32
    %46 = tpu.dynamic_rotate %7 by %c352_i32 dim 1 : vector<4x384xf32>, i32 -> vector<4x384xf32>
    %47 = vector.extract_strided_slice %46 {offsets = [0, 0], sizes = [4, 256], strides = [1, 1]} : vector<4x384xf32> to vector<4x256xf32>
    %48 = vector.extract_strided_slice %0 {offsets = [0, 7], sizes = [4, 1], strides = [1, 1]} : vector<4x9xf32> to vector<4x1xf32>
    %49 = vector.broadcast %48 : vector<4x1xf32> to vector<4x256xf32>
    %50 = arith.mulf %47, %49 : vector<4x256xf32>
    %51 = arith.addf %33, %50 : vector<4x256xf32>
    %c351_i32 = arith.constant 351 : i32
    %52 = tpu.dynamic_rotate %7 by %c351_i32 dim 1 : vector<4x384xf32>, i32 -> vector<4x384xf32>
    %53 = vector.extract_strided_slice %52 {offsets = [0, 0], sizes = [4, 256], strides = [1, 1]} : vector<4x384xf32> to vector<4x256xf32>
    %54 = vector.extract_strided_slice %0 {offsets = [0, 8], sizes = [4, 1], strides = [1, 1]} : vector<4x9xf32> to vector<4x1xf32>
    %55 = vector.broadcast %54 : vector<4x1xf32> to vector<4x256xf32>
    %56 = arith.mulf %53, %55 : vector<4x256xf32>
    %57 = arith.addf %39, %56 : vector<4x256xf32>
    %58 = vector.broadcast %4 : vector<1x256xf32> to vector<4x256xf32>
    %59 = arith.mulf %45, %58 : vector<4x256xf32>
    %60 = arith.addf %51, %59 : vector<4x256xf32>
    %61 = vector.broadcast %5 : vector<1x256xf32> to vector<4x256xf32>
    %62 = arith.mulf %57, %61 : vector<4x256xf32>
    %63 = arith.addf %60, %62 : vector<4x256xf32>
    %64 = vector.broadcast %1 : vector<4x1xf32> to vector<4x256xf32>
    %65 = arith.addf %63, %64 : vector<4x256xf32>
    %cst = arith.constant 0.000000e+00 : f32
    %66 = vector.broadcast %cst : f32 to vector<4x256xf32>
    %67 = arith.maximumf %65, %66 : vector<4x256xf32>
    %68 = arith.truncf %67 : vector<4x256xf32> to vector<4x256xbf16>
    %cst_14 = arith.constant dense<0.000000e+00> : vector<8x256xf32>
    %69 = tpu.matmul %2, %68, %cst_14 {dimension_numbers = #tpu.dot_dimension_numbers<[1], [0], [0], [1], [0, 0, 1, 1], [], []>} : vector<8x4xbf16>, vector<4x256xbf16>, vector<8x256xf32> -> vector<8x256xf32>
    %70 = vector.broadcast %3 : vector<8x1xf32> to vector<8x256xf32>
    %71 = arith.addf %69, %70 : vector<8x256xf32>
    %cst_15 = arith.constant 0.000000e+00 : f32
    %72 = vector.broadcast %cst_15 : f32 to vector<8x256xf32>
    %73 = arith.maximumf %71, %72 : vector<8x256xf32>
    %c0_16 = arith.constant 0 : index
    %c0_17 = arith.constant 0 : index
    %c0_18 = arith.constant 0 : index
    %74 = vector.load %arg8[%c0_16, %c0_17, %c0_18] : memref<2x8x256xf32, #tpu.memory_space<vmem>>, vector<1x8x256xf32>
    %75 = vector.shape_cast %74 : vector<1x8x256xf32> to vector<8x256xf32>
    %76 = vector.shape_cast %73 : vector<8x256xf32> to vector<1x8x256xf32>
    tpu.vector_store %arg8[%c0_16, %c0_17, %c0_18], %76 {strides = array<i32>} : memref<2x8x256xf32, #tpu.memory_space<vmem>>, vector<1x8x256xf32>,
    %c1 = arith.constant 1 : index
    %c0_19 = arith.constant 0 : index
    %c0_20 = arith.constant 0 : index
    %77 = vector.load %arg1[%c1, %c0_19, %c0_20] : memref<2x4x384xf32, #tpu.memory_space<vmem>>, vector<1x4x384xf32>
    %78 = vector.shape_cast %77 : vector<1x4x384xf32> to vector<4x384xf32>
    %c1_i32_21 = arith.constant 1 : i32
    %79 = tpu.dynamic_rotate %78 by %c1_i32_21 dim 1 : vector<4x384xf32>, i32 -> vector<4x384xf32>
    %80 = vector.extract_strided_slice %79 {offsets = [0, 0], sizes = [4, 256], strides = [1, 1]} : vector<4x384xf32> to vector<4x256xf32>
    %81 = vector.extract_strided_slice %0 {offsets = [0, 0], sizes = [4, 1], strides = [1, 1]} : vector<4x9xf32> to vector<4x1xf32>
    %82 = vector.broadcast %81 : vector<4x1xf32> to vector<4x256xf32>
    %83 = arith.mulf %80, %82 : vector<4x256xf32>
    %84 = vector.extract_strided_slice %78 {offsets = [0, 0], sizes = [4, 256], strides = [1, 1]} : vector<4x384xf32> to vector<4x256xf32>
    %85 = vector.extract_strided_slice %0 {offsets = [0, 1], sizes = [4, 1], strides = [1, 1]} : vector<4x9xf32> to vector<4x1xf32>
    %86 = vector.broadcast %85 : vector<4x1xf32> to vector<4x256xf32>
    %87 = arith.mulf %84, %86 : vector<4x256xf32>
    %c383_i32_22 = arith.constant 383 : i32
    %88 = tpu.dynamic_rotate %78 by %c383_i32_22 dim 1 : vector<4x384xf32>, i32 -> vector<4x384xf32>
    %89 = vector.extract_strided_slice %88 {offsets = [0, 0], sizes = [4, 256], strides = [1, 1]} : vector<4x384xf32> to vector<4x256xf32>
    %90 = vector.extract_strided_slice %0 {offsets = [0, 2], sizes = [4, 1], strides = [1, 1]} : vector<4x9xf32> to vector<4x1xf32>
    %91 = vector.broadcast %90 : vector<4x1xf32> to vector<4x256xf32>
    %92 = arith.mulf %89, %91 : vector<4x256xf32>
    %c369_i32_23 = arith.constant 369 : i32
    %93 = tpu.dynamic_rotate %78 by %c369_i32_23 dim 1 : vector<4x384xf32>, i32 -> vector<4x384xf32>
    %94 = vector.extract_strided_slice %93 {offsets = [0, 0], sizes = [4, 256], strides = [1, 1]} : vector<4x384xf32> to vector<4x256xf32>
    %95 = vector.extract_strided_slice %0 {offsets = [0, 3], sizes = [4, 1], strides = [1, 1]} : vector<4x9xf32> to vector<4x1xf32>
    %96 = vector.broadcast %95 : vector<4x1xf32> to vector<4x256xf32>
    %97 = arith.mulf %94, %96 : vector<4x256xf32>
    %98 = arith.addf %83, %97 : vector<4x256xf32>
    %c368_i32_24 = arith.constant 368 : i32
    %99 = tpu.dynamic_rotate %78 by %c368_i32_24 dim 1 : vector<4x384xf32>, i32 -> vector<4x384xf32>
    %100 = vector.extract_strided_slice %99 {offsets = [0, 0], sizes = [4, 256], strides = [1, 1]} : vector<4x384xf32> to vector<4x256xf32>
    %101 = vector.extract_strided_slice %0 {offsets = [0, 4], sizes = [4, 1], strides = [1, 1]} : vector<4x9xf32> to vector<4x1xf32>
    %102 = vector.broadcast %101 : vector<4x1xf32> to vector<4x256xf32>
    %103 = arith.mulf %100, %102 : vector<4x256xf32>
    %104 = arith.addf %87, %103 : vector<4x256xf32>
    %c367_i32_25 = arith.constant 367 : i32
    %105 = tpu.dynamic_rotate %78 by %c367_i32_25 dim 1 : vector<4x384xf32>, i32 -> vector<4x384xf32>
    %106 = vector.extract_strided_slice %105 {offsets = [0, 0], sizes = [4, 256], strides = [1, 1]} : vector<4x384xf32> to vector<4x256xf32>
    %107 = vector.extract_strided_slice %0 {offsets = [0, 5], sizes = [4, 1], strides = [1, 1]} : vector<4x9xf32> to vector<4x1xf32>
    %108 = vector.broadcast %107 : vector<4x1xf32> to vector<4x256xf32>
    %109 = arith.mulf %106, %108 : vector<4x256xf32>
    %110 = arith.addf %92, %109 : vector<4x256xf32>
    %c353_i32_26 = arith.constant 353 : i32
    %111 = tpu.dynamic_rotate %78 by %c353_i32_26 dim 1 : vector<4x384xf32>, i32 -> vector<4x384xf32>
    %112 = vector.extract_strided_slice %111 {offsets = [0, 0], sizes = [4, 256], strides = [1, 1]} : vector<4x384xf32> to vector<4x256xf32>
    %113 = vector.extract_strided_slice %0 {offsets = [0, 6], sizes = [4, 1], strides = [1, 1]} : vector<4x9xf32> to vector<4x1xf32>
    %114 = vector.broadcast %113 : vector<4x1xf32> to vector<4x256xf32>
    %115 = arith.mulf %112, %114 : vector<4x256xf32>
    %116 = arith.addf %98, %115 : vector<4x256xf32>
    %c352_i32_27 = arith.constant 352 : i32
    %117 = tpu.dynamic_rotate %78 by %c352_i32_27 dim 1 : vector<4x384xf32>, i32 -> vector<4x384xf32>
    %118 = vector.extract_strided_slice %117 {offsets = [0, 0], sizes = [4, 256], strides = [1, 1]} : vector<4x384xf32> to vector<4x256xf32>
    %119 = vector.extract_strided_slice %0 {offsets = [0, 7], sizes = [4, 1], strides = [1, 1]} : vector<4x9xf32> to vector<4x1xf32>
    %120 = vector.broadcast %119 : vector<4x1xf32> to vector<4x256xf32>
    %121 = arith.mulf %118, %120 : vector<4x256xf32>
    %122 = arith.addf %104, %121 : vector<4x256xf32>
    %c351_i32_28 = arith.constant 351 : i32
    %123 = tpu.dynamic_rotate %78 by %c351_i32_28 dim 1 : vector<4x384xf32>, i32 -> vector<4x384xf32>
    %124 = vector.extract_strided_slice %123 {offsets = [0, 0], sizes = [4, 256], strides = [1, 1]} : vector<4x384xf32> to vector<4x256xf32>
    %125 = vector.extract_strided_slice %0 {offsets = [0, 8], sizes = [4, 1], strides = [1, 1]} : vector<4x9xf32> to vector<4x1xf32>
    %126 = vector.broadcast %125 : vector<4x1xf32> to vector<4x256xf32>
    %127 = arith.mulf %124, %126 : vector<4x256xf32>
    %128 = arith.addf %110, %127 : vector<4x256xf32>
    %129 = vector.broadcast %4 : vector<1x256xf32> to vector<4x256xf32>
    %130 = arith.mulf %116, %129 : vector<4x256xf32>
    %131 = arith.addf %122, %130 : vector<4x256xf32>
    %132 = vector.broadcast %5 : vector<1x256xf32> to vector<4x256xf32>
    %133 = arith.mulf %128, %132 : vector<4x256xf32>
    %134 = arith.addf %131, %133 : vector<4x256xf32>
    %135 = vector.broadcast %1 : vector<4x1xf32> to vector<4x256xf32>
    %136 = arith.addf %134, %135 : vector<4x256xf32>
    %cst_29 = arith.constant 0.000000e+00 : f32
    %137 = vector.broadcast %cst_29 : f32 to vector<4x256xf32>
    %138 = arith.maximumf %136, %137 : vector<4x256xf32>
    %139 = arith.truncf %138 : vector<4x256xf32> to vector<4x256xbf16>
    %cst_30 = arith.constant dense<0.000000e+00> : vector<8x256xf32>
    %140 = tpu.matmul %2, %139, %cst_30 {dimension_numbers = #tpu.dot_dimension_numbers<[1], [0], [0], [1], [0, 0, 1, 1], [], []>} : vector<8x4xbf16>, vector<4x256xbf16>, vector<8x256xf32> -> vector<8x256xf32>
    %141 = vector.broadcast %3 : vector<8x1xf32> to vector<8x256xf32>
    %142 = arith.addf %140, %141 : vector<8x256xf32>
    %cst_31 = arith.constant 0.000000e+00 : f32
    %143 = vector.broadcast %cst_31 : f32 to vector<8x256xf32>
    %144 = arith.maximumf %142, %143 : vector<8x256xf32>
    %c1_32 = arith.constant 1 : index
    %c0_33 = arith.constant 0 : index
    %c0_34 = arith.constant 0 : index
    %145 = vector.load %arg8[%c1_32, %c0_33, %c0_34] : memref<2x8x256xf32, #tpu.memory_space<vmem>>, vector<1x8x256xf32>
    %146 = vector.shape_cast %145 : vector<1x8x256xf32> to vector<8x256xf32>
    %147 = vector.shape_cast %144 : vector<8x256xf32> to vector<1x8x256xf32>
    tpu.vector_store %arg8[%c1_32, %c0_33, %c0_34], %147 {strides = array<i32>} : memref<2x8x256xf32, #tpu.memory_space<vmem>>, vector<1x8x256xf32>,
    return
  }
  func.func @transform_0(%arg0: i32) -> (i32, i32, i32) {
    %c0_i32 = arith.constant 0 : i32
    %c0_i32_0 = arith.constant 0 : i32
    %c0_i32_1 = arith.constant 0 : i32
    return %arg0, %c0_i32, %c0_i32_0 : i32, i32, i32
  }
  func.func @transform_1(%arg0: i32) -> (i32, i32) {
    %c0_i32 = arith.constant 0 : i32
    %c0_i32_0 = arith.constant 0 : i32
    %c0_i32_1 = arith.constant 0 : i32
    return %c0_i32, %c0_i32_0 : i32, i32
  }
  func.func @transform_2(%arg0: i32) -> (i32, i32) {
    %c0_i32 = arith.constant 0 : i32
    %c0_i32_0 = arith.constant 0 : i32
    %c0_i32_1 = arith.constant 0 : i32
    return %c0_i32, %c0_i32_0 : i32, i32
  }
  func.func @transform_3(%arg0: i32) -> (i32, i32) {
    %c0_i32 = arith.constant 0 : i32
    %c0_i32_0 = arith.constant 0 : i32
    %c0_i32_1 = arith.constant 0 : i32
    return %c0_i32, %c0_i32_0 : i32, i32
  }
  func.func @transform_4(%arg0: i32) -> (i32, i32) {
    %c0_i32 = arith.constant 0 : i32
    %c0_i32_0 = arith.constant 0 : i32
    %c0_i32_1 = arith.constant 0 : i32
    return %c0_i32, %c0_i32_0 : i32, i32
  }
  func.func @transform_5(%arg0: i32) -> (i32, i32) {
    %c0_i32 = arith.constant 0 : i32
    %c0_i32_0 = arith.constant 0 : i32
    %c0_i32_1 = arith.constant 0 : i32
    return %c0_i32, %c0_i32_0 : i32, i32
  }
  func.func @transform_6(%arg0: i32) -> (i32, i32) {
    %c0_i32 = arith.constant 0 : i32
    %c0_i32_0 = arith.constant 0 : i32
    %c0_i32_1 = arith.constant 0 : i32
    return %c0_i32, %c0_i32_0 : i32, i32
  }
  func.func @transform_7(%arg0: i32) -> (i32, i32, i32) {
    %c0_i32 = arith.constant 0 : i32
    %c0_i32_0 = arith.constant 0 : i32
    %c0_i32_1 = arith.constant 0 : i32
    return %arg0, %c0_i32, %c0_i32_0 : i32, i32, i32
  }
}

</mosaic_0001>

<bundles_post_ra>
// kernel: tpu_custom_call.1
= control target key start
LH: loop header
LB: loop body
LE: loop exit
PB: predicated region body
PF: predicated region fallthrough
CT: control target
= control target key end

     0   :  { %12 = vsyncpa [#allocation3], 0  ;;  %s1097_s0 = inlined_call_operand.hbm [shape: f32[2,4,384], index: 0, kind: input, shape index: {}]   ;;  %s1098_s1 = inlined_call_operand.vmem [shape: f32[1,256], index: 1, kind: input, shape index: {}]   ;;  %s1099_s2 = inlined_call_operand.vmem [shape: f32[1,256], index: 2, kind: input, shape index: {}]   ;;  %s1100_s3 = inlined_call_operand.vmem [shape: f32[4,9], index: 3, kind: input, shape index: {}]   ;;  %s1101_s4 = inlined_call_operand.vmem [shape: f32[4,1], index: 4, kind: input, shape index: {}]   ;;  %s1102_s5 = inlined_call_operand.vmem [shape: bf16[8,4], index: 5, kind: input, shape index: {}]   ;;  %s1103_s6 = inlined_call_operand.vmem [shape: f32[8,1], index: 6, kind: input, shape index: {}]   ;;  %s1104_s7 = inlined_call_operand.hbm [shape: f32[2,8,256], index: 7, kind: output, shape index: {}]  }
   0x1   :  { %13 = vsyncpa [#allocation4], 0  ;;  %s18_s26 = sshll.u32 %s1097_s0, 4  ;;  %s721_s27 = smov [#allocation2]   ;;  %s19_s26 = int_to_ptr.hbm [resolvable:$true] %s18_s26 }
   0x2   :  { %s20_s28 = sshll.u32 %s721_s27, 4  ;;  %s722_s29 = smov 192   ;;  %s21_s28 = int_to_ptr.vmem [resolvable:$true] %s20_s28 }
   0x3   :  { %s723_s30 = smov 12  }
   0x4   :  { %26 = dma.hbm_to_vmem [thread:$0]  %s19_s26, 384, %s21_s28, [#allocation3], %s722_s29, %s722_s29, %s723_s30  }
   0x5   :  { %717 = dma.done.wait [#allocation3], 384  }
   0x6   :  { %718 = vsyncadd [#allocation3], 4294966912  ;;  %v724_v0 = vmov 2   ;;  %v725_v1 = vmov 0   ;;  %v789_v2 = vld [vmem:[#allocation2] sm:$0xff]  ;;  %v726_v5 = vmov 5   ;;  %v69_v47 = vlaneseq }
   0x7   :  { %660 = vset.pattern.permute.xlu1 %v724_v0  ;;  %658 = vset.pattern.permute.xlu2 %v725_v1  ;;  %v794_v3 = vld [vmem:[%s1100_s3] sm:$0xf]  ;;  %v796_v4 = vld [vmem:[#allocation2 + $0x8] sm:$0xf]  ;;  %54 = vst [vmem:[#allocation1] ss:$2 sm:$0xff] %v789_v2 }
   0x8   :  { %109 = vperm.xlu1 %660, %v794_v3   ;;  %76 = vperm.xlu2 %658, %v794_v3   ;;  %56 = vst [vmem:[#allocation1 + $0x10] ss:$2 sm:$0xff] %v796_v4  ;;  %s727_s0 = smov 1   ;;  %v728_v8 = vmov 3   ;;  %v729_v10 = vmov 6   ;;  %s730_s3 = smov 127  }
   0x9   :  { %662 = vset.pattern.permute.xlu0 %v726_v5  ;;  %v731_v14 = vmov 4   ;;  %s732_s10 = smov 113   ;;  %v733_v18 = vmov 1   ;;  %s734_s11 = smov 112   ;;  %v736_v28 = vmov 7   ;;  %v737_v29 = vmov 8  }
   0xa   :  { %s735_s12 = smov 111   ;;  %s738_s13 = smov 97   ;;  %v839_v34 = vld [vmem:[#allocation2 + $0x14] sm:$0xf]  ;;  %v45_v37 = vld [vmem:[%s1101_s4] sm:$0xf] }
   0xb   :  { %s739_s14 = smov 96   ;;  %s740_s15 = smov 95   ;;  %v869_v48 = vand.u32 127, %v69_v47  ;;  %vm167_vm4 = vcmask 1043456   ;;  %vm333_vm9 = vcmask 1041408   ;;  %vm329_vm10 = vcmask 31744  }
   0xc   :  { %s617_s25 = sshll.u32 %s1104_s7, 4  ;;  %s743_s26 = smov 256   ;;  %s618_s25 = int_to_ptr.hbm [resolvable:$true] %s617_s25 }
   0xd   :  { %vm71_vm0 = vcmp.lt.s32.totalorder %v869_v48, 1  ;;  %vm129_vm1 = vcmp.lt.s32.totalorder %v869_v48, 113  ;;  %vm212_vm2 = vcmp.lt.s32.totalorder %v869_v48, 97  ;;  %vm155_vm3 = vcmp.lt.s32.totalorder %v869_v48, 112  ;;  %s744_s27 = smov 16  }
   0xe   :  { %v57_v6 = vld.sshfl [vmem:[#allocation1] sm:$0xff pattern:$0x75316420]  ;;  %v58_v7 = vld.sshfl [vmem:[#allocation1 + $0x8] sm:$0xff pattern:$0x75316420] }
   0xf   :  { %63 = vrot.lane.b32.xlu0 %v57_v6, %s727_s0  ;;  %90 = vst [vmem:[#allocation1] ss:$2 sm:$0xff] %v789_v2  ;;  %v59_v9 = vld.sshfl [vmem:[#allocation1 + $0x10] sm:$0xff pattern:$0x75316420]  ;;  %vm186_vm5 = vcmp.lt.s32.totalorder %v869_v48, 111 }
  0x10   :  { %659 = vset.pattern.permute.xlu2 %v728_v8  ;;  %92 = vst [vmem:[#allocation1 + $0x10] ss:$2 sm:$0xff] %v796_v4  ;;  %663 = vset.pattern.permute.xlu1 %v729_v10  ;;  %vm238_vm6 = vcmp.lt.s32.totalorder %v869_v48, 96  ;;  %vm105_vm7 = vcmp.lt.s32.totalorder %v869_v48, 127  ;;  %vm268_vm8 = vcmp.lt.s32.totalorder %v869_v48, 95 }
  0x11   :  { %133 = vperm.xlu2 %659, %v794_v3  }
  0x16   :  { %v93_v11 = vld.sshfl [vmem:[#allocation1] sm:$0xff pattern:$0x75316420]  ;;  %v94_v12 = vld.sshfl [vmem:[#allocation1 + $0x8] sm:$0xff pattern:$0x75316420] }
  0x17   :  { %65 = vrot.lane.b32.xlu0 %v58_v7, %s727_s0  ;;  %101 = vrot.lane.b32.xlu1 %v94_v12, %s730_s3  ;;  %114 = vst [vmem:[#allocation1] ss:$2 sm:$0xff] %v789_v2  ;;  %v95_v13 = vld.sshfl [vmem:[#allocation1 + $0x10] sm:$0xff pattern:$0x75316420] }
  0x18   :  { %116 = vst [vmem:[#allocation1 + $0x10] ss:$2 sm:$0xff] %v796_v4 }
  0x19   :  { %661 = vset.pattern.permute.xlu2 %v731_v14 }
  0x1a   :  { %159 = vperm.xlu2 %661, %v794_v3  }
  0x1e   :  { %v118_v15 = vld.sshfl [vmem:[#allocation1 + $0x8] sm:$0xff pattern:$0x75316420]  ;;  %v117_v16 = vld.sshfl [vmem:[#allocation1] sm:$0xff pattern:$0x75316420] }
  0x1f   :  { %67 = vrot.lane.b32.xlu0 %v59_v9, %s727_s0  ;;  %125 = vrot.lane.b32.xlu1 %v118_v15, %s732_s10  ;;  %140 = vst [vmem:[#allocation1] ss:$2 sm:$0xff] %v789_v2  ;;  %v119_v17 = vld.sshfl [vmem:[#allocation1 + $0x10] sm:$0xff pattern:$0x75316420] }
  0x20   :  { %142 = vst [vmem:[#allocation1 + $0x10] ss:$2 sm:$0xff] %v796_v4 }
  0x22   :  { %103 = vrot.lane.b32.xlu2 %v95_v13, %s730_s3 }
  0x23   :  { %664 = vset.pattern.permute.xlu2 %v733_v18  ;;  %v905_v18 = vld [vmem:[%s1098_s1] sm:$0x3] }
  0x26   :  { %v143_v19 = vld.sshfl [vmem:[#allocation1] sm:$0xff pattern:$0x75316420]  ;;  %v144_v20 = vld.sshfl [vmem:[#allocation1 + $0x8] sm:$0xff pattern:$0x75316420] }
  0x27   :  { %123 = vrot.lane.b32.xlu0 %v117_v16, %s732_s10  ;;  %127 = vrot.lane.b32.xlu1 %v119_v17, %s732_s10  ;;  %171 = vst [vmem:[#allocation1] ss:$2 sm:$0xff] %v789_v2  ;;  %v145_v21 = vld.sshfl [vmem:[#allocation1 + $0x10] sm:$0xff pattern:$0x75316420] }
  0x28   :  { %173 = vst [vmem:[#allocation1 + $0x10] ss:$2 sm:$0xff] %v796_v4 }
  0x2a   :  { %82 = vperm.xlu2 %664, %v794_v3  }
  0x2e   :  { %v175_v22 = vld.sshfl [vmem:[#allocation1 + $0x8] sm:$0xff pattern:$0x75316420]  ;;  %v174_v23 = vld.sshfl [vmem:[#allocation1] sm:$0xff pattern:$0x75316420] }
  0x2f   :  { %190 = vperm.xlu0 %662, %v794_v3   ;;  %216 = vperm.xlu1 %663, %v794_v3   ;;  %v176_v24 = vld.sshfl [vmem:[#allocation1 + $0x10] sm:$0xff pattern:$0x75316420]  ;;  %197 = vst [vmem:[#allocation1] ss:$2 sm:$0xff] %v789_v2 }
  0x30   :  { %199 = vst [vmem:[#allocation1 + $0x10] ss:$2 sm:$0xff] %v796_v4 }
  0x32   :  { %153 = vrot.lane.b32.xlu2 %v145_v21, %s734_s11 }
  0x33   :  { %667 = vset.pattern.permute.xlu2 %v725_v1 }
  0x36   :  { %v200_v25 = vld.sshfl [vmem:[#allocation1] sm:$0xff pattern:$0x75316420]  ;;  %v201_v26 = vld.sshfl [vmem:[#allocation1 + $0x8] sm:$0xff pattern:$0x75316420] }
  0x37   :  { %182 = vrot.lane.b32.xlu0 %v175_v22, %s735_s12  ;;  %151 = vrot.lane.b32.xlu1 %v144_v20, %s734_s11  ;;  %v202_v27 = vld.sshfl [vmem:[#allocation1 + $0x10] sm:$0xff pattern:$0x75316420]  ;;  %223 = vst [vmem:[#allocation1] ss:$2 sm:$0xff] %v789_v2 }
  0x38   :  { %225 = vst [vmem:[#allocation1 + $0x10] ss:$2 sm:$0xff] %v796_v4  ;;  %665 = vset.pattern.permute.xlu0 %v736_v28  ;;  %666 = vset.pattern.permute.xlu1 %v737_v29 }
  0x3a   :  { %149 = vrot.lane.b32.xlu2 %v143_v19, %s734_s11  ;;  %v281_v19 = vperm.slane %v905_v18, 1 }
  0x3e   :  { %v226_v30 = vld.sshfl [vmem:[#allocation1] sm:$0xff pattern:$0x75316420]  ;;  %v227_v31 = vld.sshfl [vmem:[#allocation1 + $0x8] sm:$0xff pattern:$0x75316420] }
  0x3f   :  { %210 = vrot.lane.b32.xlu0 %v202_v27, %s738_s13  ;;  %184 = vrot.lane.b32.xlu1 %v176_v24, %s735_s12  ;;  %v228_v32 = vld.sshfl [vmem:[#allocation1 + $0x10] sm:$0xff pattern:$0x75316420]  ;;  %253 = vst [vmem:[#allocation1] ss:$2 sm:$0xff] %v789_v2 }
  0x40   :  { %255 = vst [vmem:[#allocation1 + $0x10] ss:$2 sm:$0xff] %v796_v4 }
  0x42   :  { %208 = vrot.lane.b32.xlu2 %v201_v26, %s738_s13 }
  0x46   :  { %v257_v36 = vld.sshfl [vmem:[#allocation1 + $0x8] sm:$0xff pattern:$0x75316420]  ;;  %v256_v38 = vld.sshfl [vmem:[#allocation1] sm:$0xff pattern:$0x75316420] }
  0x47   :  { %180 = vrot.lane.b32.xlu0 %v174_v23, %s735_s12  ;;  %99 = vrot.lane.b32.xlu1 %v93_v11, %s730_s3  ;;  %v258_v33 = vld.sshfl [vmem:[#allocation1 + $0x10] sm:$0xff pattern:$0x75316420] }
  0x48   :  { %377 = vst [vmem:[#allocation1 + $0x10] ss:$2 sm:$0xff] %v839_v34 }
  0x4a   :  { %234 = vrot.lane.b32.xlu2 %v227_v31, %s739_s14 }
  0x4f   :  { %236 = vrot.lane.b32.xlu0 %v228_v32, %s739_s14  ;;  %206 = vrot.lane.b32.xlu1 %v200_v25, %s738_s13  ;;  %v380_v35 = vld.sshfl [vmem:[#allocation1 + $0x10] sm:$0xff pattern:$0x75316420]  ;;  %v280_v25 = vperm.slane %v905_v18, 0 }
  0x50   :  { %397 = vst [vmem:[#allocation1 + $0x10] ss:$2 sm:$0xff] %v839_v34 }
  0x52   :  { %266 = vrot.lane.b32.xlu2 %v258_v33, %s740_s15 }
  0x57   :  { %242 = vperm.xlu0 %665, %v794_v3   ;;  %264 = vrot.lane.b32.xlu1 %v257_v36, %s740_s15  ;;  %v400_v5 = vld.sshfl [vmem:[#allocation1 + $0x10] sm:$0xff pattern:$0x75316420] }
  0x58   :  { %416 = vst [vmem:[#allocation1 + $0x10] ss:$2 sm:$0xff] %v839_v34 }
  0x5a   :  { %232 = vrot.lane.b32.xlu2 %v226_v30, %s739_s14 }
  0x5f   :  { %272 = vperm.xlu1 %666, %v794_v3   ;;  %668 = vset.pattern.permute.xlu0 %v725_v1  ;;  %v419_v8 = vld.sshfl [vmem:[#allocation1 + $0x10] sm:$0xff pattern:$0x75316420] }
  0x60   :  { %437 = vst [vmem:[#allocation1 + $0x10] ss:$2 sm:$0xff] %v839_v34  ;;  %427 = vrot.lane.b32.xlu0 %v419_v8, %s732_s10 }
  0x62   :  { %307 = vperm.xlu2 %667, %v45_v37   ;;  %v856_v39 = vpop.permute.xlu2 %76  ;;  %v741_v37 = vmov 839922192  }
  0x67   :  { %262 = vrot.lane.b32.xlu1 %v256_v38, %s740_s15  ;;  %v440_v12 = vld.sshfl [vmem:[#allocation1 + $0x10] sm:$0xff pattern:$0x75316420]  ;;  %v85_v38 = vunpack.c.l.s4 %v741_v37 }
  0x68   :  { %462 = vst [vmem:[#allocation1 + $0x10] ss:$2 sm:$0xff] %v839_v34  ;;  %408 = vrot.lane.b32.xlu0 %v400_v5, %s730_s3  ;;  %v968_v5 = vld [vmem:[%s1099_s2] sm:$0x3] }
  0x6b   :  { %v859_v40 = vpop.permute.xlu2 %133 }
  0x6f   :  { %388 = vrot.lane.b32.xlu1 %v380_v35, %s727_s0  ;;  %v465_v21 = vld.sshfl [vmem:[#allocation1 + $0x10] sm:$0xff pattern:$0x75316420] }
  0x70   :  { %483 = vst [vmem:[#allocation1 + $0x10] ss:$2 sm:$0xff] %v839_v34  ;;  %448 = vrot.lane.b32.xlu0 %v440_v12, %s734_s11  ;;  %473 = vrot.lane.b32.xlu2 %v465_v21, %s735_s12  ;;  %v293_v21 = vperm.slane %v968_v5, 0 }
  0x74   :  { %v863_v42 = vpop.permute.xlu2 %159 }
  0x77   :  { %v486_v32 = vld.sshfl [vmem:[#allocation1 + $0x10] sm:$0xff pattern:$0x75316420] }
  0x78   :  { %494 = vrot.lane.b32.xlu1 %v486_v32, %s738_s13  ;;  %504 = vst [vmem:[#allocation1 + $0x10] ss:$2 sm:$0xff] %v839_v34 }
  0x7a   :  { %v861_v41 = vpop.permute.xlu1 %109 }
  0x7c   :  { %v867_v46 = vpop.permute.xlu2 %103 }
  0x81   :  { %v64_v43 = vpop.permute.xlu0 %63 }
  0x84   :  { %v871_v51 = vpop.permute.xlu2 %82 }
  0x89   :  { %v66_v44 = vpop.permute.xlu0 %65  ;;  %v865_v45 = vpop.permute.xlu1 %101 }
  0x8a   :  { %v72_v52 = vsel %vm71_vm0, %v64_v43, %v66_v44 }
  0x8b   :  { %v80_v58 = vmul.f32 %v856_v39, %v72_v52  ;;  %v507_v52 = vld.sshfl [vmem:[#allocation1 + $0x10] sm:$0xff pattern:$0x75316420] }
  0x8c   :  { %v154_v62 = vpop.permute.xlu2 %153  ;;  %515 = vrot.lane.b32.xlu1 %v507_v52, %s739_s14  ;;  %529 = vst [vmem:[#allocation1 + $0x10] ss:$2 sm:$0xff] %v839_v34 }
  0x91   :  { %v68_v49 = vpop.permute.xlu0 %67  ;;  %v126_v50 = vpop.permute.xlu1 %125 }
  0x92   :  { %v73_v53 = vsel %vm71_vm0, %v68_v49, %v64_v43 }
  0x93   :  { %v79_v59 = vmul.f32 %v856_v39, %v73_v53  ;;  %v106_v53 = vsel %vm105_vm7, %v865_v45, %v867_v46 }
  0x94   :  { %v150_v4 = vpop.permute.xlu2 %149 }
  0x99   :  { %v124_v54 = vpop.permute.xlu0 %123  ;;  %v128_v55 = vpop.permute.xlu1 %127 }
  0x9a   :  { %v131_v56 = vsel %vm129_vm1, %v124_v54, %v126_v50  ;;  %v130_v57 = vsel %vm129_vm1, %v126_v50, %v128_v55  ;;  %v86_v54 = vunpack.c.0.s8 %v85_v38 }
  0x9b   :  { %v136_v60 = vmul.f32 %v859_v40, %v131_v56  ;;  %v137_v61 = vmul.f32 %v859_v40, %v130_v57 }
  0x9c   :  { %v209_v9 = vpop.permute.xlu2 %208 }
  0x9d   :  { %v138_v63 = vadd.f32 %v136_v60, %v79_v59  ;;  %v139_v0 = vadd.f32 %v137_v61, %v80_v58  ;;  %v113_v61 = vmul.f32 %v861_v41, %v106_v53 }
  0xa1   :  { %v887_v1 = vpop.permute.xlu0 %190  ;;  %v889_v3 = vpop.permute.xlu1 %216 }
  0xa4   :  { %v235_v17 = vpop.permute.xlu2 %234 }
  0xa9   :  { %v892_v6 = vpop.permute.xlu0 %182  ;;  %v152_v7 = vpop.permute.xlu1 %151 }
  0xaa   :  { %v156_v36 = vsel %vm155_vm3, %v152_v7, %v154_v62  ;;  %v157_v55 = vsel %vm155_vm3, %v150_v4, %v152_v7  ;;  %v956_v62 = vperm.slane %v871_v51, %v86_v54 }
  0xab   :  { %v163_v43 = vmul.f32 %v863_v42, %v156_v36  ;;  %v990_v36 = vld [vmem:[#allocation2 + $0xc] sm:$0xff] }
  0xac   :  { %v267_v29 = vpop.permute.xlu2 %266 }
  0xad   :  { %v166_v59 = vrot.slane %v163_v43, 4 }
  0xb1   :  { %v211_v10 = vpop.permute.xlu0 %210  ;;  %v185_v11 = vpop.permute.xlu1 %184 }
  0xb2   :  { %v213_v13 = vsel %vm212_vm2, %v209_v9, %v211_v10  ;;  %v187_v44 = vsel %vm186_vm5, %v892_v6, %v185_v11 }
  0xb3   :  { %v220_v16 = vmul.f32 %v889_v3, %v213_v13  ;;  %v194_v56 = vmul.f32 %v887_v1, %v187_v44 }
  0xb4   :  { %v233_v50 = vpop.permute.xlu2 %232 }
  0xb5   :  { %v222_v20 = vadd.f32 %v220_v16, %v139_v0  ;;  %v240_v46 = vsel %vm238_vm6, %v233_v50, %v235_v17  ;;  %v196_v7 = vadd.f32 %v194_v56, %v113_v61 }
  0xb7   :  { %v285_v24 = vmul.f32 %v281_v19, %v222_v20 }
  0xb9   :  { %v100_v14 = vpop.permute.xlu1 %99  ;;  %v181_v15 = vpop.permute.xlu0 %180  ;;  %v288_v30 = vrot.slane %v285_v24, 4 }
  0xba   :  { %v188_v0 = vsel %vm186_vm5, %v181_v15, %v892_v6  ;;  %v107_v4 = vsel %vm105_vm7, %v100_v14, %v865_v45  ;;  %v294_v6 = vperm.slane %v968_v5, 1  ;;  %v89_v45 = vmul.f32 %v956_v62, %v789_v2 }
  0xbb   :  { %v193_v10 = vmul.f32 %v887_v1, %v188_v0  ;;  %v112_v11 = vmul.f32 %v861_v41, %v107_v4  ;;  %v532_v4 = vld.sshfl [vmem:[#allocation1 + $0x10] sm:$0xff pattern:$0x75316420] }
  0xc1   :  { %v207_v22 = vpop.permute.xlu1 %206  ;;  %v237_v27 = vpop.permute.xlu0 %236 }
  0xc2   :  { %v214_v23 = vsel %vm212_vm2, %v207_v22, %v209_v9  ;;  %v239_v47 = vsel %vm238_vm6, %v235_v17, %v237_v27  ;;  %v195_v17 = vadd.f32 %v193_v10, %v112_v11 }
  0xc3   :  { %v219_v26 = vmul.f32 %v889_v3, %v214_v23 }
  0xc5   :  { %v221_v28 = vadd.f32 %v219_v26, %v138_v63  ;;  %v162_v63 = vmul.f32 %v863_v42, %v157_v55  ;;  %v308_v26 = vpop.permute.xlu2 %307 }
  0xc7   :  { %v284_v31 = vmul.f32 %v280_v25, %v221_v28  ;;  %v168_v9 = vsel %vm167_vm4, %v162_v63, %v166_v59 }
  0xc8   :  { %v170_v15 = vadd.f32 %v168_v9, %v89_v45 }
  0xc9   :  { %v265_v33 = vpop.permute.xlu1 %264  ;;  %v289_v35 = vsel %vm167_vm4, %v284_v31, %v288_v30  ;;  %v934_v49 = vpop.permute.xlu0 %242 }
  0xca   :  { %v246_v57 = vmul.f32 %v934_v49, %v239_v47  ;;  %v269_v60 = vsel %vm268_vm8, %v265_v33, %v267_v29  ;;  %v245_v51 = vmul.f32 %v934_v49, %v240_v46  ;;  %v986_v29 = vperm.slane %v308_v26, %v86_v54 }
  0xcc   :  { %v249_v8 = vrot.slane %v246_v57, 4 }
  0xce   :  { %v250_v13 = vsel %vm167_vm4, %v245_v51, %v249_v8  ;;  %v474_v51 = vpop.permute.xlu2 %473 }
  0xcf   :  { %v252_v23 = vadd.f32 %v250_v13, %v170_v15 }
  0xd1   :  { %v947_v58 = vpop.permute.xlu1 %272  ;;  %v291_v28 = vadd.f32 %v289_v35, %v252_v23 }
  0xd2   :  { %v276_v34 = vmul.f32 %v947_v58, %v269_v60  ;;  %v428_v11 = vpop.permute.xlu0 %427 }
  0xd4   :  { %v278_v12 = vadd.f32 %v276_v34, %v196_v7 }
  0xd6   :  { %v298_v20 = vmul.f32 %v294_v6, %v278_v12 }
  0xd8   :  { %v301_v27 = vrot.slane %v298_v20, 4 }
  0xd9   :  { %v263_v14 = vpop.permute.xlu1 %262 }
  0xda   :  { %v270_v16 = vsel %vm268_vm8, %v263_v14, %v265_v33  ;;  %v409_v13 = vpop.permute.xlu0 %408 }
  0xdb   :  { %v275_v22 = vmul.f32 %v947_v58, %v270_v16 }
  0xdd   :  { %v277_v24 = vadd.f32 %v275_v22, %v195_v17 }
  0xdf   :  { %v297_v2 = vmul.f32 %v293_v21, %v277_v24 }
  0xe1   :  { %v302_v30 = vsel %vm167_vm4, %v297_v2, %v301_v27  ;;  %v389_v9 = vpop.permute.xlu1 %388 }
  0xe2   :  { %v304_v31 = vadd.f32 %v302_v30, %v291_v28  ;;  %v449_v16 = vpop.permute.xlu0 %448 }
  0xe4   :  { %v314_v32 = vadd.f32 %v986_v29, %v304_v31 }
  0xe6   :  { %v315_v33 = vmax.f32 %v314_v32, 0.0 }
  0xe8   :  { %317 = vst [vmem:[#allocation1] ss:$2 sm:$0xff] %v315_v33 }
  0xea   :  { %v495_v12 = vpop.permute.xlu1 %494 }
  0xef   :  { %v318_v37 = vld.sshfl [vmem:[#allocation1] sm:$0xff pattern:$0x75316420]  ;;  %v319_v38 = vld.sshfl [vmem:[#allocation1 + $0x8] sm:$0xff pattern:$0x75316420] }
  0xf0   :  { %v322_v43 = vpack.c.bf16 %v318_v37, %v318_v37  ;;  %v323_v44 = vpack.c.bf16 %v319_v38, %v319_v38  ;;  %375 = vst [vmem:[#allocation1] ss:$2 sm:$0xff] %v990_v36 }
  0xf2   :  { %v335_v35 = vsel %vm333_vm9, %v322_v43, 0  ;;  %v338_v47 = vsel %vm333_vm9, %v323_v44, 0 }
  0xf3   :  { %347 = vmatpush.bf16.msra.mxu0 %v335_v35  ;;  %360 = vmatpush.bf16.msra.mxu1 %v338_v47 }
  0xf7   :  { %v379_v50 = vld.sshfl [vmem:[#allocation1 + $0x8] sm:$0xff pattern:$0x75316420]  ;;  %v378_v52 = vld.sshfl [vmem:[#allocation1] sm:$0xff pattern:$0x75316420] }
  0xf8   :  { %386 = vrot.lane.b32.xlu1 %v379_v50, %s727_s0  ;;  %384 = vrot.lane.b32.xlu0 %v378_v52, %s727_s0  ;;  %395 = vst [vmem:[#allocation1] ss:$2 sm:$0xff] %v990_v36 }
  0xfe   :  { %v516_v14 = vpop.permute.xlu1 %515 }
  0xff   :  { %v399_v53 = vld.sshfl [vmem:[#allocation1 + $0x8] sm:$0xff pattern:$0x75316420]  ;;  %v398_v54 = vld.sshfl [vmem:[#allocation1] sm:$0xff pattern:$0x75316420] }
 0x100   :  { %406 = vrot.lane.b32.xlu2 %v399_v53, %s730_s3  ;;  %414 = vst [vmem:[#allocation1] ss:$2 sm:$0xff] %v990_v36 }
 0x107   :  { %v417_v55 = vld.sshfl [vmem:[#allocation1] sm:$0xff pattern:$0x75316420]  ;;  %v418_v56 = vld.sshfl [vmem:[#allocation1 + $0x8] sm:$0xff pattern:$0x75316420] }
 0x108   :  { %404 = vrot.lane.b32.xlu2 %v398_v54, %s730_s3  ;;  %423 = vrot.lane.b32.xlu1 %v417_v55, %s732_s10  ;;  %435 = vst [vmem:[#allocation1] ss:$2 sm:$0xff] %v990_v36 }
 0x10f   :  { %v438_v57 = vld.sshfl [vmem:[#allocation1] sm:$0xff pattern:$0x75316420]  ;;  %v439_v59 = vld.sshfl [vmem:[#allocation1 + $0x8] sm:$0xff pattern:$0x75316420] }
 0x110   :  { %425 = vrot.lane.b32.xlu2 %v418_v56, %s732_s10  ;;  %444 = vrot.lane.b32.xlu0 %v438_v57, %s734_s11  ;;  %460 = vst [vmem:[#allocation1] ss:$2 sm:$0xff] %v990_v36 }
 0x117   :  { %v464_v60 = vld.sshfl [vmem:[#allocation1 + $0x8] sm:$0xff pattern:$0x75316420]  ;;  %v463_v46 = vld.sshfl [vmem:[#allocation1] sm:$0xff pattern:$0x75316420] }
 0x118   :  { %446 = vrot.lane.b32.xlu2 %v439_v59, %s734_s11  ;;  %471 = vrot.lane.b32.xlu1 %v464_v60, %s735_s12  ;;  %481 = vst [vmem:[#allocation1] ss:$2 sm:$0xff] %v990_v36 }
 0x11f   :  { %v485_v61 = vld.sshfl [vmem:[#allocation1 + $0x8] sm:$0xff pattern:$0x75316420]  ;;  %v484_v34 = vld.sshfl [vmem:[#allocation1] sm:$0xff pattern:$0x75316420] }
 0x120   :  { %469 = vrot.lane.b32.xlu1 %v463_v46, %s735_s12  ;;  %492 = vrot.lane.b32.xlu0 %v485_v61, %s738_s13  ;;  %502 = vst [vmem:[#allocation1] ss:$2 sm:$0xff] %v990_v36 }
 0x121   :  { %490 = vrot.lane.b32.xlu2 %v484_v34, %s738_s13 }
 0x127   :  { %v506_v63 = vld.sshfl [vmem:[#allocation1 + $0x8] sm:$0xff pattern:$0x75316420]  ;;  %v505_v0 = vld.sshfl [vmem:[#allocation1] sm:$0xff pattern:$0x75316420] }
 0x128   :  { %513 = vrot.lane.b32.xlu0 %v506_v63, %s739_s14  ;;  %511 = vrot.lane.b32.xlu1 %v505_v0, %s739_s14  ;;  %527 = vst [vmem:[#allocation1] ss:$2 sm:$0xff] %v990_v36 }
 0x12f   :  { %v531_v7 = vld.sshfl [vmem:[#allocation1 + $0x8] sm:$0xff pattern:$0x75316420]  ;;  %v530_v8 = vld.sshfl [vmem:[#allocation1] sm:$0xff pattern:$0x75316420] }
 0x130   :  { %540 = vrot.lane.b32.xlu0 %v532_v4, %s740_s15  ;;  %538 = vrot.lane.b32.xlu2 %v531_v7, %s740_s15 }
 0x138   :  { %536 = vrot.lane.b32.xlu2 %v530_v8, %s740_s15 }
 0x15a   :  { %v407_v10 = vpop.permute.xlu2 %406 }
 0x15b   :  { %v410_v46 = vsel %vm105_vm7, %v407_v10, %v409_v13 }
 0x15c   :  { %v413_v13 = vmul.f32 %v410_v46, %v861_v41 }
 0x162   :  { %v405_v45 = vpop.permute.xlu2 %404 }
 0x163   :  { %v411_v61 = vsel %vm105_vm7, %v405_v45, %v407_v10 }
 0x16a   :  { %v426_v15 = vpop.permute.xlu2 %425  ;;  %v387_v17 = vpop.permute.xlu1 %386 }
 0x16b   :  { %v385_v22 = vpop.permute.xlu0 %384  ;;  %v429_v32 = vsel %vm129_vm1, %v426_v15, %v428_v11 }
 0x16c   :  { %v390_v31 = vsel %vm71_vm0, %v385_v22, %v387_v17  ;;  %v432_v38 = vmul.f32 %v429_v32, %v859_v40  ;;  %v391_v50 = vsel %vm71_vm0, %v389_v9, %v385_v22 }
 0x16d   :  { %v393_v37 = vmul.f32 %v390_v31, %v856_v39  ;;  %v392_v9 = vmul.f32 %v391_v50, %v856_v39 }
 0x16f   :  { %v434_v55 = vadd.f32 %v432_v38, %v393_v37 }
 0x172   :  { %v447_v20 = vpop.permute.xlu2 %446 }
 0x173   :  { %v450_v43 = vsel %vm155_vm3, %v447_v20, %v449_v16 }
 0x174   :  { %v453_v56 = vmul.f32 %v450_v43, %v863_v42 }
 0x176   :  { %v456_v11 = vrot.slane %v453_v56, 4 }
 0x17a   :  { %v424_v23 = vpop.permute.xlu1 %423 }
 0x17b   :  { %v491_v24 = vpop.permute.xlu2 %490  ;;  %v430_v44 = vsel %vm129_vm1, %v424_v23, %v426_v15 }
 0x17c   :  { %v431_v34 = vmul.f32 %v430_v44, %v859_v40 }
 0x182   :  { %v445_v26 = vpop.permute.xlu0 %444 }
 0x183   :  { %v451_v52 = vsel %vm155_vm3, %v445_v26, %v447_v20 }
 0x184   :  { %v452_v0 = vmul.f32 %v451_v52, %v863_v42  ;;  %v412_v42 = vmul.f32 %v411_v61, %v861_v41  ;;  %v394_v41 = vmul.f32 %v990_v36, %v956_v62 }
 0x186   :  { %v457_v15 = vsel %vm167_vm4, %v452_v0, %v456_v11 }
 0x18a   :  { %v472_v2 = vpop.permute.xlu1 %471  ;;  %v539_v30 = vpop.permute.xlu2 %538 }
 0x18b   :  { %v475_v57 = vsel %vm186_vm5, %v472_v2, %v474_v51  ;;  %v46_v51 = vld [vmem:[%s1102_s5] sm:$0xf] }
 0x18c   :  { %v478_v10 = vmul.f32 %v475_v57, %v887_v1  ;;  %630 = vmatmul.msk.bf16.vlgmr.msra.gmra.mxu0 %vm329_vm10, %v46_v51  ;;  %631 = vmatmul.msk.bf16.vlgmr.msra.gmra.mxu1 %vm329_vm10, %v46_v51 }
 0x18e   :  { %v480_v22 = vadd.f32 %v478_v10, %v413_v13 }
 0x192   :  { %v470_v27 = vpop.permute.xlu1 %469  ;;  %v493_v28 = vpop.permute.xlu0 %492 }
 0x193   :  { %v496_v33 = vsel %vm212_vm2, %v493_v28, %v495_v12  ;;  %v476_v53 = vsel %vm186_vm5, %v470_v27, %v472_v2  ;;  %v497_v63 = vsel %vm212_vm2, %v491_v24, %v493_v28  ;;  %v537_v8 = vpop.permute.xlu2 %536  ;;  %v459_v28 = vadd.f32 %v457_v15, %v394_v41 }
 0x194   :  { %v499_v35 = vmul.f32 %v496_v33, %v889_v3  ;;  %v477_v4 = vmul.f32 %v476_v53, %v887_v1  ;;  %v498_v12 = vmul.f32 %v497_v63, %v889_v3  ;;  %v543_v39 = vsel %vm268_vm8, %v537_v8, %v539_v30  ;;  %v47_v1 = vld [vmem:[%s1103_s6] sm:$0xff]  ;;  %s742_s6 = smov [#allocation5]  }
 0x195   :  { %326 = vperm.xlu0 %668, %v47_v1   ;;  %v544_v26 = vmul.f32 %v543_v39, %v947_v58  ;;  %s615_s22 = sshll.u32 %s742_s6, 4  ;;  %s616_s22 = int_to_ptr.vmem [resolvable:$true] %s615_s22 }
 0x196   :  { %v501_v7 = vadd.f32 %v499_v35, %v434_v55  ;;  %v479_v16 = vadd.f32 %v477_v4, %v412_v42 }
 0x198   :  { %v549_v17 = vmul.f32 %v501_v7, %v281_v19  ;;  %v546_v31 = vadd.f32 %v544_v26, %v479_v16 }
 0x19a   :  { %v514_v47 = vpop.permute.xlu0 %513  ;;  %v512_v60 = vpop.permute.xlu1 %511  ;;  %v552_v19 = vrot.slane %v549_v17, 4  ;;  %v556_v48 = vmul.f32 %v546_v31, %v293_v21 }
 0x19b   :  { %v517_v54 = vsel %vm238_vm6, %v514_v47, %v516_v14  ;;  %v518_v40 = vsel %vm238_vm6, %v512_v60, %v514_v47  ;;  %v433_v14 = vadd.f32 %v431_v34, %v392_v9 }
 0x19c   :  { %v520_v59 = vmul.f32 %v517_v54, %v934_v49  ;;  %v519_v20 = vmul.f32 %v518_v40, %v934_v49 }
 0x19d   :  { %v500_v24 = vadd.f32 %v498_v12, %v433_v14 }
 0x19e   :  { %v523_v45 = vrot.slane %v520_v59, 4 }
 0x19f   :  { %v548_v33 = vmul.f32 %v500_v24, %v280_v25 }
 0x1a0   :  { %v524_v2 = vsel %vm167_vm4, %v519_v20, %v523_v45 }
 0x1a1   :  { %v526_v32 = vadd.f32 %v524_v2, %v459_v28  ;;  %v553_v36 = vsel %vm167_vm4, %v548_v33, %v552_v19 }
 0x1a2   :  { %v541_v3 = vpop.permute.xlu0 %540 }
 0x1a3   :  { %v542_v23 = vsel %vm268_vm8, %v539_v30, %v541_v3  ;;  %v555_v37 = vadd.f32 %v553_v36, %v526_v32 }
 0x1a4   :  { %v545_v27 = vmul.f32 %v542_v23, %v947_v58 }
 0x1a6   :  { %v547_v49 = vadd.f32 %v545_v27, %v480_v22 }
 0x1a8   :  { %v557_v62 = vmul.f32 %v547_v49, %v294_v6 }
 0x1aa   :  { %v560_v30 = vrot.slane %v557_v62, 4 }
 0x1ac   :  { %v561_v58 = vsel %vm167_vm4, %v556_v48, %v560_v30 }
 0x1ad   :  { %v563_v38 = vadd.f32 %v561_v58, %v555_v37 }
 0x1af   :  { %v564_v43 = vadd.f32 %v563_v38, %v986_v29 }
 0x1b1   :  { %v565_v44 = vmax.f32 %v564_v43, 0.0 }
 0x1b3   :  { %567 = vst [vmem:[#allocation1] ss:$2 sm:$0xff] %v565_v44 }
 0x1ba   :  { %v568_v35 = vld.sshfl [vmem:[#allocation1] sm:$0xff pattern:$0x75316420]  ;;  %v569_v18 = vld.sshfl [vmem:[#allocation1 + $0x8] sm:$0xff pattern:$0x75316420] }
 0x1bb   :  { %v572_v25 = vpack.c.bf16 %v568_v35, %v568_v35  ;;  %v573_v47 = vpack.c.bf16 %v569_v18, %v569_v18 }
 0x1bd   :  { %v575_v6 = vsel %vm333_vm9, %v572_v25, 0  ;;  %v578_v5 = vsel %vm333_vm9, %v573_v47, 0 }
 0x1be   :  { %587 = vmatpush.bf16.msra.mxu2 %v575_v6  ;;  %600 = vmatpush.bf16.msra.mxu3 %v578_v5 }
 0x1c1   :  { %632 = vmatmul.msk.bf16.vlgmr.msra.gmra.mxu2 %vm329_vm10, %v46_v51  ;;  %633 = vmatmul.msk.bf16.vlgmr.msra.gmra.mxu3 %vm329_vm10, %v46_v51 }
 0x207   :  { %v327_v21 = vpop.permute.xlu0 %326 }
 0x209   :  { %v349_v50 = vpop.f32.mrf.mxu0  ;;  %v362_v52 = vpop.f32.mrf.mxu1 }
 0x20a   :  { %v350_v29 = vadd.f32 %v349_v50, %v327_v21  ;;  %v363_v53 = vadd.f32 %v362_v52, %v327_v21 }
 0x20c   :  { %v366_v54 = vmax.f32 %v350_v29, 0.0  ;;  %v367_v55 = vmax.f32 %v363_v53, 0.0 }
 0x20e   :  { %368 = vst [vmem:[#allocation5] sm:$0xff] %v366_v54 }
 0x20f   :  { %369 = vst [vmem:[#allocation5 + $0x8] sm:$0xff] %v367_v55 }
 0x211   :  { %v364_v56 = vpop.f32.mrf.mxu1  ;;  %v351_v57 = vpop.f32.mrf.mxu0 }
 0x244   :  { %v589_v59 = vpop.f32.mrf.mxu2  ;;  %v602_v60 = vpop.f32.mrf.mxu3 }
 0x245   :  { %v590_v46 = vadd.f32 %v589_v59, %v327_v21  ;;  %v603_v61 = vadd.f32 %v602_v60, %v327_v21 }
 0x247   :  { %v606_v34 = vmax.f32 %v590_v46, 0.0  ;;  %v607_v63 = vmax.f32 %v603_v61, 0.0 }
 0x249   :  { %609 = vst [vmem:[#allocation5 + $0x10] sm:$0xff] %v606_v34 }
 0x24a   :  { %610 = vst [vmem:[#allocation5 + $0x18] sm:$0xff] %v607_v63 }
 0x24b   :  { %623 = dma.vmem_to_hbm [thread:$0]  %s616_s22, 512, %s618_s25, [#allocation4], %s743_s26, %s743_s26, %s744_s27  }
 0x24c   :  { %v591_v0 = vpop.f32.mrf.mxu2  ;;  %v604_v4 = vpop.f32.mrf.mxu3 }
 0x24d   :  { %719 = dma.done.wait [#allocation4], 512  }
 0x24e   :  { %720 = vsyncadd [#allocation4], 4294966784 }
 0x24f   :  { %628 = vsyncpa [#allocation3], 1 }
 0x250   :  { %629 = vsyncpa [#allocation4], 1 }

</bundles_post_ra>
